<compile_context>
chip_gen: v6e
topology: v6e:2x2x1
jax: 0.10.0
libtpu: 0.0.40
codegen_flags: <defaults>
</compile_context>

<pallas_src>
import jax
import jax.numpy as jnp
from jax.experimental import pallas as pl
from jax.experimental.pallas import tpu as pltpu


def _fused_conv1x1_relu_kernel(x_ref, w_ref, o_ref):
    # x_ref: (1, K, tm)  = concat([x1; x2; x3; ones], channel axis)
    # w_ref: (Cout, K)   = concat([W, W, W, 3*bias], input-channel axis)
    # o_ref: (1, Cout, tm)
    acc = jnp.dot(w_ref[...], x_ref[0], preferred_element_type=jnp.float32)
    o_ref[0] = jnp.maximum(acc, 0.0).astype(o_ref.dtype)


def _pick_row_tile(hw, n_batch, max_tile=2048):
    """Pick a lane tile for the pixel axis. Returns (tm, padded_hw).

    Guarantees tm is a multiple of 128 (or the full padded dim) so the
    (Cout, tm) output stores are unmasked/lane-dense, and gives the grid at
    least 2 steps when batch==1 so both v7x TensorCores get work.
    """
    hwp = pl.cdiv(hw, 128) * 128              # lane-dense output slab
    if hwp <= max_tile:
        tm = hwp
        if n_batch == 1 and tm >= 256 and tm % 256 == 0:
            tm //= 2                          # >=2 grid steps for the megacore
        return tm, hwp
    best = 128
    for tm in range(max_tile, 127, -128):     # largest 128-multiple divisor
        if hwp % tm == 0:
            best = tm
            break
    if best < 512:                            # no decent divisor: pad up
        best = max_tile
        hwp = pl.cdiv(hw, best) * best
    return best, hwp


def conv1x1_sum_relu(x1, x2, x3, weight, bias, *, max_tile=2048):
    """x1,x2,x3: (N, Cin, H, W) f32; weight: (Cout, Cin); bias: (Cout,). NCHW out."""
    N, Cin, H, W = x1.shape
    Cout = weight.shape[0]
    HW = H * W
    tm, HWp = _pick_row_tile(HW, N, max_tile)

    # Host-side channel concat (inputs are tiny vs. the 512-wide output) plus
    # a ones-row so the bias rides the MXU contraction for free.
    ones = jnp.ones((N, 1, HW), dtype=x1.dtype)
    xcat = jnp.concatenate(
        [x1.reshape(N, Cin, HW),
         x2.reshape(N, Cin, HW),
         x3.reshape(N, Cin, HW),
         ones],
        axis=1)                                          # (N, K, HW), K = 3*Cin+1
    if HWp != HW:
        xcat = jnp.pad(xcat, ((0, 0), (0, 0), (0, HWp - HW)))
    K = 3 * Cin + 1
    wcat = jnp.concatenate(
        [weight, weight, weight, (3.0 * bias)[:, None]], axis=1)   # (Cout, K)

    out = pl.pallas_call(
        _fused_conv1x1_relu_kernel,
        out_shape=jax.ShapeDtypeStruct((N, Cout, HWp), jnp.float32),
        grid_spec=pltpu.PrefetchScalarGridSpec(
            num_scalar_prefetch=0,
            grid=(N, HWp // tm),
            in_specs=[
                pl.BlockSpec((1, K, tm), lambda n, i: (n, 0, i)),      # x concat
                pl.BlockSpec((Cout, K), lambda n, i: (0, 0)),          # W|3b resident
            ],
            out_specs=pl.BlockSpec((1, Cout, tm), lambda n, i: (n, 0, i)),
        ),
        compiler_params=pltpu.CompilerParams(
            dimension_semantics=("parallel", "parallel")),
    )(xcat, wcat)

    if HWp != HW:
        out = out[:, :, :HW]
    return out.reshape(N, Cout, H, W)          # zero-cost reshape back to NCHW


def reference(x1, x2, x3, weight, bias):
    def conv(x):
        return jnp.einsum("nchw,oc->nohw", x, weight) + bias[None, :, None, None]
    return jnp.maximum(conv(x1) + conv(x2) + conv(x3), 0.0)


def _run_case(key, N, Cin, H, W, Cout):
    k1, k2, k3, kw, kb = jax.random.split(key, 5)
    x1 = jax.random.normal(k1, (N, Cin, H, W), dtype=jnp.float32)
    x2 = jax.random.normal(k2, (N, Cin, H, W), dtype=jnp.float32)
    x3 = jax.random.normal(k3, (N, Cin, H, W), dtype=jnp.float32)
    bound = 1.0 / (Cin ** 0.5)
    weight = jax.random.uniform(kw, (Cout, Cin), jnp.float32, -bound, bound)
    bias = jax.random.uniform(kb, (Cout,), jnp.float32, -bound, bound)

    out = conv1x1_sum_relu(x1, x2, x3, weight, bias)
    out = jax.block_until_ready(out)

    ref = reference(x1, x2, x3, weight, bias)
    assert out.shape == (N, Cout, H, W)
    assert jnp.allclose(out, ref, atol=1e-4, rtol=1e-4)


if __name__ == "__main__":
    key = jax.random.PRNGKey(0)
    ka, kb = jax.random.split(key)

    # Small shapes consistent with the module: Cin=9, Cout=512.
    _run_case(ka, N=1, Cin=9, H=16, W=16, Cout=512)   # HW multiple of 128
    _run_case(kb, N=1, Cin=9, H=7, W=7, Cout=512)     # awkward HW -> padded lane tile

    print("KERNEL_OK")
</pallas_src>

<mosaic_0001>
module attributes {stable_mosaic.version = 11 : i64} {
  func.func @_fused_conv1x1_relu_kernel(%arg0: i32, %arg1: i32, %arg2: memref<1x28x128xf32, #tpu.memory_space<vmem>>, %arg3: memref<512x28xf32, #tpu.memory_space<vmem>>, %arg4: memref<1x512x128xf32, #tpu.memory_space<vmem>>) attributes {dimension_semantics = [#tpu.dimension_semantics<parallel>, #tpu.dimension_semantics<parallel>], iteration_bounds = array<i64: 1, 2>, scalar_prefetch = 0 : i64, scratch_operands = 0 : i64, tpu.core_type = #tpu.core_type<tc>, window_params = [{transform_indices = @transform_0, window_bounds = array<i64: 1, 28, 128>}, {pipeline_mode = #tpu.pipeline_mode<synchronous>, transform_indices = @transform_1, window_bounds = array<i64: 512, 28>}, {transform_indices = @transform_2, window_bounds = array<i64: 1, 512, 128>}]} {
    %c0 = arith.constant 0 : index
    %c0_0 = arith.constant 0 : index
    %0 = vector.load %arg3[%c0, %c0_0] : memref<512x28xf32, #tpu.memory_space<vmem>>, vector<512x28xf32>
    %c0_1 = arith.constant 0 : index
    %c0_2 = arith.constant 0 : index
    %c0_3 = arith.constant 0 : index
    %1 = vector.load %arg2[%c0_1, %c0_2, %c0_3] : memref<1x28x128xf32, #tpu.memory_space<vmem>>, vector<1x28x128xf32>
    %2 = vector.shape_cast %1 : vector<1x28x128xf32> to vector<28x128xf32>
    %cst = arith.constant dense<0.000000e+00> : vector<512x128xf32>
    %3 = tpu.matmul %0, %2, %cst {dimension_numbers = #tpu.dot_dimension_numbers<[1], [0], [0], [1], [0, 0, 1, 1], [], []>} : vector<512x28xf32>, vector<28x128xf32>, vector<512x128xf32> -> vector<512x128xf32>
    %cst_4 = arith.constant 0.000000e+00 : f32
    %4 = vector.broadcast %cst_4 : f32 to vector<512x128xf32>
    %5 = arith.maximumf %3, %4 : vector<512x128xf32>
    %c0_5 = arith.constant 0 : index
    %c0_6 = arith.constant 0 : index
    %c0_7 = arith.constant 0 : index
    %6 = vector.load %arg4[%c0_5, %c0_6, %c0_7] : memref<1x512x128xf32, #tpu.memory_space<vmem>>, vector<1x512x128xf32>
    %7 = vector.shape_cast %6 : vector<1x512x128xf32> to vector<512x128xf32>
    %8 = vector.shape_cast %5 : vector<512x128xf32> to vector<1x512x128xf32>
    tpu.vector_store %arg4[%c0_5, %c0_6, %c0_7], %8 {strides = array<i32>} : memref<1x512x128xf32, #tpu.memory_space<vmem>>, vector<1x512x128xf32>,
    return
  }
  func.func @transform_0(%arg0: i32, %arg1: i32) -> (i32, i32, i32) {
    %c0_i32 = arith.constant 0 : i32
    %c0_i32_0 = arith.constant 0 : i32
    return %arg0, %c0_i32, %arg1 : i32, i32, i32
  }
  func.func @transform_1(%arg0: i32, %arg1: i32) -> (i32, i32) {
    %c0_i32 = arith.constant 0 : i32
    %c0_i32_0 = arith.constant 0 : i32
    %c0_i32_1 = arith.constant 0 : i32
    return %c0_i32, %c0_i32_0 : i32, i32
  }
  func.func @transform_2(%arg0: i32, %arg1: i32) -> (i32, i32, i32) {
    %c0_i32 = arith.constant 0 : i32
    %c0_i32_0 = arith.constant 0 : i32
    return %arg0, %c0_i32, %arg1 : i32, i32, i32
  }
}

</mosaic_0001>

<bundles_post_ra>
// kernel: tpu_custom_call.1
= control target key start
LH: loop header
LB: loop body
LE: loop exit
PB: predicated region body
PF: predicated region fallthrough
CT: control target
= control target key end

     0   :  { %7 = vsyncpa [#allocation4], 0  ;;  %s1939_s0 = inlined_call_operand.vmem [shape: f32[1,28,256], index: 0, kind: input, shape index: {}]   ;;  %s1940_s1 = inlined_call_operand.vmem [shape: f32[512,28], index: 1, kind: input, shape index: {}]   ;;  %s1941_s2 = inlined_call_operand.hbm [shape: f32[1,512,256], index: 2, kind: output, shape index: {}]  }
   0x1   :  { %9 = vsyncpa [#allocation4 + $0x1], 0  ;;  %s1493_s9 = smov 0   ;;  %s1495_s10 = smov 0  }
   0x2   :  { %s1497_s11 = smov 0   ;;  %s1499_s12 = smov 0  }
   0x3   :  { %s1501_s13 = smov 0   ;;  %s1503_s14 = smov 0  }
   0x4 LB: > { %s1080_s15 = sadd.s32 4294967295, %s1472_s14   ;;  %s1081_s16 = sadd.s32 4294967294, %s1472_s14   ;;  %s1472_s14 = sphi %s1503_s14, %s15_s14   ;;  %s1468_s13 = sphi %s1501_s13, %s1948_s13   ;;  %s1464_s12 = sphi %s1499_s12, %s1947_s12   ;;  %s1460_s11 = sphi %s1497_s11, %s1946_s11   ;;  %s1456_s10 = sphi %s1495_s10, %s1945_s10   ;;  %s1452_s9 = sphi %s1493_s9, %s1944_s9  }
   0x5   : > { %s24_s17 = sadd.s32 1, %s1468_s13  ;;  %s36_s18 = sadd.s32 1, %s1460_s11 }
   0x6   : > { %p25_p0 = scmp.ge.s32.totalorder %s24_s17, 2  ;;  %p43_p1 = scmp.ne.s32.totalorder %s1460_s11, %s1456_s10 }
   0x7   : > { %p44_p2 = scmp.eq.s32.totalorder %s1472_s14, 0  ;;  %p96_p3 = scmp.eq.s32.totalorder %s1080_s15, 1 }
   0x8   : > { %s1950_s17 = smov (%p25_p0, %s24_s17), 0  ;;  %p101_p6 = scmp.ne.s32.totalorder %s1456_s10, %s1452_s9 }
   0x9   : > { %p45_p4 = por %p44_p2, %p43_p1  ;;  %p1532_p5 = por %p96_p3, %p43_p1 }
   0xa   : > { %s32_s20 = ssub.s32 %s1468_s13, %s1950_s17  ;;  %p102_p8 = scmp.eq.s32.totalorder %s1081_s16, 1 }
   0xb   : > { %p34_p7 = scmp.eq.s32.totalorder %s32_s20, 0  ;;  %p1083_p10 = scmp.ge.s32.totalorder %s1472_s14, 2 }
   0xc   : > { %p1543_p9 = por %p102_p8, %p101_p6 }
   0xd   : > { %s1541_s21 = scalar_select %p34_p7, %s1460_s11, %s36_s18  }
   0xe   : > { %121 = sbr.rel (%p1083_p10) target bundleno = 25 (0x19), region = 20 }
  0x13   : > { %124 = sbr.rel (!%p45_p4) target bundleno = 25 (0x19), region = 24  ;;  %s126_s23 = sand.u32 (%p45_p4), 1, %s1460_s11  }
  0x14   : > { %s1085_s24 = sshll.u32 (%p45_p4), %s1468_s13, 3  ;;  %s1084_s25 = sshll.u32 (%p45_p4), %s126_s23, 5 }
  0x15   : > { %s132_s28 = scalar_lea.vmem (%p45_p4), %s1939_s0, %s1085_s24  ;;  %s128_s29 = scalar_lea.vmem (%p45_p4), [#allocation2], %s1084_s25 }
  0x16   : > { %v167_v0 = vld [vmem:[%s132_s28] sm:$0xff] (%p45_p4)  ;;  %v169_v1 = vld [vmem:[%s132_s28 + $0x10] sm:$0xff] (%p45_p4) }
  0x17   : > { %v171_v2 = vld [vmem:[%s132_s28 + $0x20] sm:$0xff] (%p45_p4)  ;;  %168 = vst [vmem:[%s128_s29] sm:$0xff] (%p45_p4), %v167_v0  ;;  %170 = vst [vmem:[%s128_s29 + $0x8] sm:$0xff] (%p45_p4), %v169_v1  ;;  %v173_v3 = vld [vmem:[%s132_s28 + $0x30] sm:$0xff] (%p45_p4) }
  0x18   : > { %172 = vst [vmem:[%s128_s29 + $0x10] sm:$0xff] %v171_v2  ;;  %174 = vst [vmem:[%s128_s29 + $0x18] sm:$0xff] %v173_v3 }
  0x19 PF: > { %p1086_p11 = scmp.ge.s32.totalorder %s1472_s14, 1  ;;  %p179_p12 = scmp.lt.s32.totalorder %s1472_s14, 3 }
  0x1b   : > { %p180_p13 = pnand %p1086_p11, %p179_p12 }
  0x1c   : > { %s1558_s30 = sand.u32 (!%p180_p13), 1, %s1456_s10   ;;  %s1155_s26 = sshll.u32 (!%p180_p13), %s1464_s12, 7 }
  0x1d   : > { %183 = sbr.rel (%p180_p13) target bundleno = 316 (0x13c), region = 62  ;;  %s1087_s7 = sshll.u32 (!%p180_p13), %s1558_s30, 5 }
  0x1e   : > { %s188_s8 = scalar_lea.vmem (!%p180_p13), [#allocation2], %s1087_s7  ;;  %s1088_s24 = sshll.u32 (!%p180_p13), %s1558_s30, 9 }
  0x1f   : > { %s1818_s25 = scalar_lea.vmem (!%p180_p13), [#allocation3], %s1088_s24  ;;  %s1885_s12 = scalar_lea.hbm (!%p180_p13), %s1941_s2, %s1155_s26 }
  0x20   : > { %s1000_s27 = sshll.u32 (!%p180_p13), %s1818_s25, 4  ;;  %s986_s3 = scalar_lea.sflag (!%p180_p13), [#allocation4], %s1558_s30  ;;  %s1887_s27 = int_to_ptr.vmem [resolvable:$true] %s1000_s27 }
  0x21   : > { %s1396_s4 = scalar_lea.vmem (!%p180_p13), %s1887_s27, 8192  ;;  %s1474_s5 = smov (!%p180_p13), [#allocation3]  }
  0x22   : > { %v207_v4 = vld [vmem:[%s1940_s1] sm:$0xff]  ;;  %vm275_vm0 = vcmask 228352   ;;  %vm468_vm1 = vcmask 1043456   ;;  %v274_v6 = vld [vmem:[%s188_s8 + $0x18] sm:$0xf]  ;;  %v273_v7 = vld [vmem:[%s188_s8 + $0x10] sm:$0xff]  ;;  %p1397_p0 = scmp.ne.s32.totalorder %s1887_s27, %s1396_s4 }
  0x23   : > { %v239_v5 = vld [vmem:[%s1940_s1 + $0x100] sm:$0xff]  ;;  %1234 = vmatprep.mubr.msk.f32.mxu0 %vm275_vm0, %v207_v4  ;;  %1226 = vmatprep.subr.msk.mxu0 %vm468_vm1, %v274_v6  ;;  %v272_v8 = vld [vmem:[%s188_s8 + $0x8] sm:$0xff]  ;;  %v209_v12 = vld [vmem:[%s1940_s1 + $0x10] sm:$0xff]  ;;  %s1400_s6 = sshll.u32 %s1474_s5, 4  ;;  %s1401_s6 = int_to_ptr.vmem [resolvable:$false] %s1400_s6 }
  0x24   : > { %1282 = vmatprep.mubr.msk.f32.mxu1 %vm275_vm0, %v239_v5  ;;  %1330 = vmatprep.subr.msk.mxu1 %vm468_vm1, %v274_v6  ;;  %v271_v9 = vld [vmem:[%s188_s8] sm:$0xff]  ;;  %v208_v10 = vld [vmem:[%s1940_s1 + $0x8] sm:$0xff]  ;;  %v241_v13 = vld [vmem:[%s1940_s1 + $0x110] sm:$0xff]  ;;  %p1398_p1 = pnand %p1397_p0, %p1532_p5  ;;  %s1402_s7 = scalar_lea.vmem %s1401_s6, 16384 }
  0x25   : > { %1227 = vmatpush3.msk.msra.mxu0 %vm468_vm1, %v274_v6  ;;  %1334 = vmatpush3.msk.msra.mxu1 %vm468_vm1, %v274_v6  ;;  %v240_v11 = vld [vmem:[%s1940_s1 + $0x108] sm:$0xff]  ;;  %v210_v14 = vld [vmem:[%s1940_s1 + $0x18] sm:$0xff]  ;;  %v211_v16 = vld [vmem:[%s1940_s1 + $0x20] sm:$0xff]  ;;  %p1403_p3 = scmp.lt.s32.totalorder %s1887_s27, %s1401_s6  ;;  %p1404_p4 = scmp.lt.s32.totalorder %s1402_s7, %s1396_s4 }
  0x26   : > { %1228 = vmatprep.subr.mxu0 %v273_v7  ;;  %1331 = vmatprep.subr.mxu1 %v273_v7  ;;  %v242_v15 = vld [vmem:[%s1940_s1 + $0x118] sm:$0xff]  ;;  %v243_v17 = vld [vmem:[%s1940_s1 + $0x120] sm:$0xff]  ;;  %v212_v18 = vld [vmem:[%s1940_s1 + $0x28] sm:$0xff]  ;;  %p1399_p2 = pneg %p1398_p1 }
  0x27   : > { %1229 = vmatpush3.msra.mxu0 %v273_v7  ;;  %1335 = vmatpush3.msra.mxu1 %v273_v7  ;;  %v244_v19 = vld [vmem:[%s1940_s1 + $0x128] sm:$0xff]  ;;  %v213_v20 = vld [vmem:[%s1940_s1 + $0x30] sm:$0xff]  ;;  %v214_v22 = vld [vmem:[%s1940_s1 + $0x38] sm:$0xff]  ;;  %p1405_p6 = por %p1404_p4, %p1403_p3 }
  0x28   : > { %1230 = vmatprep.subr.mxu0 %v272_v8  ;;  %1332 = vmatprep.subr.mxu1 %v272_v8  ;;  %v245_v21 = vld [vmem:[%s1940_s1 + $0x130] sm:$0xff]  ;;  %v246_v23 = vld [vmem:[%s1940_s1 + $0x138] sm:$0xff]  ;;  %v215_v24 = vld [vmem:[%s1940_s1 + $0x40] sm:$0xff] }
  0x29   : > { %1231 = vmatpush3.msra.mxu0 %v272_v8  ;;  %1336 = vmatpush3.msra.mxu1 %v272_v8  ;;  %v247_v25 = vld [vmem:[%s1940_s1 + $0x140] sm:$0xff]  ;;  %v216_v26 = vld [vmem:[%s1940_s1 + $0x48] sm:$0xff]  ;;  %v217_v28 = vld [vmem:[%s1940_s1 + $0x50] sm:$0xff]  ;;  %p1406_p7 = pnand %p1405_p6, %p1399_p2 }
  0x2a   : > { %1232 = vmatprep.subr.mxu0 %v271_v9  ;;  %1333 = vmatprep.subr.mxu1 %v271_v9  ;;  %v248_v27 = vld [vmem:[%s1940_s1 + $0x148] sm:$0xff]  ;;  %v249_v29 = vld [vmem:[%s1940_s1 + $0x150] sm:$0xff]  ;;  %v218_v30 = vld [vmem:[%s1940_s1 + $0x58] sm:$0xff] }
  0x2b   : > { %1233 = vmatpush3.msra.mxu0 %v271_v9  ;;  %1337 = vmatpush3.msra.mxu1 %v271_v9  ;;  %v250_v31 = vld [vmem:[%s1940_s1 + $0x158] sm:$0xff]  ;;  %v219_v32 = vld [vmem:[%s1940_s1 + $0x60] sm:$0xff]  ;;  %v220_v34 = vld [vmem:[%s1940_s1 + $0x68] sm:$0xff] }
  0x2c   : > { %1235 = vmatmul.mubr.msk.f32.vlgmr.msra.gmra.mxu0 %vm275_vm0, %v208_v10  ;;  %1283 = vmatmul.mubr.msk.f32.vlgmr.msra.gmra.mxu1 %vm275_vm0, %v240_v11  ;;  %v251_v33 = vld [vmem:[%s1940_s1 + $0x160] sm:$0xff]  ;;  %v252_v35 = vld [vmem:[%s1940_s1 + $0x168] sm:$0xff]  ;;  %v221_v36 = vld [vmem:[%s1940_s1 + $0x70] sm:$0xff] }
  0x2d   : > { %1237 = vmatprep.mubr.msk.f32.mxu0 %vm275_vm0, %v209_v12  ;;  %1285 = vmatprep.mubr.msk.f32.mxu1 %vm275_vm0, %v241_v13  ;;  %v253_v37 = vld [vmem:[%s1940_s1 + $0x170] sm:$0xff]  ;;  %v222_v38 = vld [vmem:[%s1940_s1 + $0x78] sm:$0xff]  ;;  %v223_v40 = vld [vmem:[%s1940_s1 + $0x80] sm:$0xff] }
  0x2e   : > { %v254_v39 = vld [vmem:[%s1940_s1 + $0x178] sm:$0xff]  ;;  %v255_v41 = vld [vmem:[%s1940_s1 + $0x180] sm:$0xff]  ;;  %v224_v42 = vld [vmem:[%s1940_s1 + $0x88] sm:$0xff] }
  0x2f   : > { %v256_v43 = vld [vmem:[%s1940_s1 + $0x188] sm:$0xff]  ;;  %v225_v44 = vld [vmem:[%s1940_s1 + $0x90] sm:$0xff]  ;;  %v226_v46 = vld [vmem:[%s1940_s1 + $0x98] sm:$0xff] }
  0x30   : > { %1238 = vmatmul.mubr.msk.f32.gmra.mxu0 %vm275_vm0, %v210_v14  ;;  %1286 = vmatmul.mubr.msk.f32.gmra.mxu1 %vm275_vm0, %v242_v15  ;;  %v257_v45 = vld [vmem:[%s1940_s1 + $0x190] sm:$0xff]  ;;  %v258_v47 = vld [vmem:[%s1940_s1 + $0x198] sm:$0xff]  ;;  %v227_v48 = vld [vmem:[%s1940_s1 + $0xa0] sm:$0xff] }
  0x31   : > { %1240 = vmatprep.mubr.msk.f32.mxu0 %vm275_vm0, %v211_v16  ;;  %1288 = vmatprep.mubr.msk.f32.mxu1 %vm275_vm0, %v243_v17  ;;  %v259_v49 = vld [vmem:[%s1940_s1 + $0x1a0] sm:$0xff]  ;;  %v228_v50 = vld [vmem:[%s1940_s1 + $0xa8] sm:$0xff]  ;;  %v229_v52 = vld [vmem:[%s1940_s1 + $0xb0] sm:$0xff] }
  0x32   : > { %v260_v51 = vld [vmem:[%s1940_s1 + $0x1a8] sm:$0xff]  ;;  %v261_v53 = vld [vmem:[%s1940_s1 + $0x1b0] sm:$0xff]  ;;  %v230_v54 = vld [vmem:[%s1940_s1 + $0xb8] sm:$0xff] }
  0x33   : > { %v262_v55 = vld [vmem:[%s1940_s1 + $0x1b8] sm:$0xff]  ;;  %v231_v56 = vld [vmem:[%s1940_s1 + $0xc0] sm:$0xff]  ;;  %v232_v58 = vld [vmem:[%s1940_s1 + $0xc8] sm:$0xff] }
  0x34   : > { %1241 = vmatmul.mubr.msk.f32.gmra.mxu0 %vm275_vm0, %v212_v18  ;;  %1289 = vmatmul.mubr.msk.f32.gmra.mxu1 %vm275_vm0, %v244_v19  ;;  %v263_v57 = vld [vmem:[%s1940_s1 + $0x1c0] sm:$0xff]  ;;  %v264_v59 = vld [vmem:[%s1940_s1 + $0x1c8] sm:$0xff]  ;;  %v233_v60 = vld [vmem:[%s1940_s1 + $0xd0] sm:$0xff] }
  0x35   : > { %1243 = vmatprep.mubr.msk.f32.mxu0 %vm275_vm0, %v213_v20  ;;  %1291 = vmatprep.mubr.msk.f32.mxu1 %vm275_vm0, %v245_v21  ;;  %v265_v61 = vld [vmem:[%s1940_s1 + $0x1d0] sm:$0xff]  ;;  %v234_v62 = vld [vmem:[%s1940_s1 + $0xd8] sm:$0xff]  ;;  %v235_v0 = vld [vmem:[%s1940_s1 + $0xe0] sm:$0xff] }
  0x36   : > { %v266_v63 = vld [vmem:[%s1940_s1 + $0x1d8] sm:$0xff]  ;;  %v267_v1 = vld [vmem:[%s1940_s1 + $0x1e0] sm:$0xff]  ;;  %v236_v2 = vld [vmem:[%s1940_s1 + $0xe8] sm:$0xff] }
  0x37   : > { %v268_v3 = vld [vmem:[%s1940_s1 + $0x1e8] sm:$0xff]  ;;  %v237_v4 = vld [vmem:[%s1940_s1 + $0xf0] sm:$0xff]  ;;  %v238_v6 = vld [vmem:[%s1940_s1 + $0xf8] sm:$0xff] }
  0x38   : > { %1244 = vmatmul.mubr.msk.f32.gmra.mxu0 %vm275_vm0, %v214_v22  ;;  %1292 = vmatmul.mubr.msk.f32.gmra.mxu1 %vm275_vm0, %v246_v23  ;;  %v269_v5 = vld [vmem:[%s1940_s1 + $0x1f0] sm:$0xff]  ;;  %v270_v7 = vld [vmem:[%s1940_s1 + $0x1f8] sm:$0xff] }
  0x39   : > { %1246 = vmatprep.mubr.msk.f32.mxu0 %vm275_vm0, %v215_v24  ;;  %1294 = vmatprep.mubr.msk.f32.mxu1 %vm275_vm0, %v247_v25 }
  0x3c   : > { %1247 = vmatmul.mubr.msk.f32.gmra.mxu0 %vm275_vm0, %v216_v26  ;;  %1295 = vmatmul.mubr.msk.f32.gmra.mxu1 %vm275_vm0, %v248_v27 }
  0x3d   : > { %1249 = vmatprep.mubr.msk.f32.mxu0 %vm275_vm0, %v217_v28  ;;  %1297 = vmatprep.mubr.msk.f32.mxu1 %vm275_vm0, %v249_v29 }
  0x40   : > { %1250 = vmatmul.mubr.msk.f32.gmra.mxu0 %vm275_vm0, %v218_v30  ;;  %1298 = vmatmul.mubr.msk.f32.gmra.mxu1 %vm275_vm0, %v250_v31 }
  0x41   : > { %1252 = vmatprep.mubr.msk.f32.mxu0 %vm275_vm0, %v219_v32  ;;  %1300 = vmatprep.mubr.msk.f32.mxu1 %vm275_vm0, %v251_v33 }
  0x44   : > { %1253 = vmatmul.mubr.msk.f32.gmra.mxu0 %vm275_vm0, %v220_v34  ;;  %1301 = vmatmul.mubr.msk.f32.gmra.mxu1 %vm275_vm0, %v252_v35 }
  0x45   : > { %1255 = vmatprep.mubr.msk.f32.mxu0 %vm275_vm0, %v221_v36  ;;  %1303 = vmatprep.mubr.msk.f32.mxu1 %vm275_vm0, %v253_v37 }
  0x48   : > { %1256 = vmatmul.mubr.msk.f32.gmra.mxu0 %vm275_vm0, %v222_v38  ;;  %1304 = vmatmul.mubr.msk.f32.gmra.mxu1 %vm275_vm0, %v254_v39 }
  0x49   : > { %1258 = vmatprep.mubr.msk.f32.mxu0 %vm275_vm0, %v223_v40  ;;  %1306 = vmatprep.mubr.msk.f32.mxu1 %vm275_vm0, %v255_v41 }
  0x4c   : > { %1259 = vmatmul.mubr.msk.f32.gmra.mxu0 %vm275_vm0, %v224_v42  ;;  %1307 = vmatmul.mubr.msk.f32.gmra.mxu1 %vm275_vm0, %v256_v43 }
  0x4d   : > { %1261 = vmatprep.mubr.msk.f32.mxu0 %vm275_vm0, %v225_v44  ;;  %1309 = vmatprep.mubr.msk.f32.mxu1 %vm275_vm0, %v257_v45 }
  0x50   : > { %1262 = vmatmul.mubr.msk.f32.gmra.mxu0 %vm275_vm0, %v226_v46  ;;  %1310 = vmatmul.mubr.msk.f32.gmra.mxu1 %vm275_vm0, %v258_v47 }
  0x51   : > { %1264 = vmatprep.mubr.msk.f32.mxu0 %vm275_vm0, %v227_v48  ;;  %1312 = vmatprep.mubr.msk.f32.mxu1 %vm275_vm0, %v259_v49 }
  0x54   : > { %1265 = vmatmul.mubr.msk.f32.gmra.mxu0 %vm275_vm0, %v228_v50  ;;  %1313 = vmatmul.mubr.msk.f32.gmra.mxu1 %vm275_vm0, %v260_v51 }
  0x55   : > { %1267 = vmatprep.mubr.msk.f32.mxu0 %vm275_vm0, %v229_v52  ;;  %1315 = vmatprep.mubr.msk.f32.mxu1 %vm275_vm0, %v261_v53 }
  0x58   : > { %1268 = vmatmul.mubr.msk.f32.gmra.mxu0 %vm275_vm0, %v230_v54  ;;  %1316 = vmatmul.mubr.msk.f32.gmra.mxu1 %vm275_vm0, %v262_v55 }
  0x59   : > { %1270 = vmatprep.mubr.msk.f32.mxu0 %vm275_vm0, %v231_v56  ;;  %1318 = vmatprep.mubr.msk.f32.mxu1 %vm275_vm0, %v263_v57 }
  0x5c   : > { %1271 = vmatmul.mubr.msk.f32.gmra.mxu0 %vm275_vm0, %v232_v58  ;;  %1319 = vmatmul.mubr.msk.f32.gmra.mxu1 %vm275_vm0, %v264_v59 }
  0x5d   : > { %1273 = vmatprep.mubr.msk.f32.mxu0 %vm275_vm0, %v233_v60  ;;  %1321 = vmatprep.mubr.msk.f32.mxu1 %vm275_vm0, %v265_v61 }
  0x60   : > { %1274 = vmatmul.mubr.msk.f32.gmra.mxu0 %vm275_vm0, %v234_v62  ;;  %1322 = vmatmul.mubr.msk.f32.gmra.mxu1 %vm275_vm0, %v266_v63 }
  0x61   : > { %1276 = vmatprep.mubr.msk.f32.mxu0 %vm275_vm0, %v235_v0  ;;  %1324 = vmatprep.mubr.msk.f32.mxu1 %vm275_vm0, %v267_v1 }
  0x64   : > { %1277 = vmatmul.mubr.msk.f32.gmra.mxu0 %vm275_vm0, %v236_v2  ;;  %1325 = vmatmul.mubr.msk.f32.gmra.mxu1 %vm275_vm0, %v268_v3 }
  0x65   : > { %1279 = vmatprep.mubr.msk.f32.mxu0 %vm275_vm0, %v237_v4  ;;  %1327 = vmatprep.mubr.msk.f32.mxu1 %vm275_vm0, %v269_v5 }
  0x68   : > { %1280 = vmatmul.mubr.msk.f32.gmra.mxu0 %vm275_vm0, %v238_v6  ;;  %1328 = vmatmul.mubr.msk.f32.gmra.mxu1 %vm275_vm0, %v270_v7 }
  0xec   : > { %v1236_v8 = vpop.f32.mrf.mxu0  ;;  %v1284_v9 = vpop.f32.mrf.mxu1 }
  0xed   : > { %v858_v10 = vmax.f32 %v1236_v8, 0.0  ;;  %v890_v11 = vmax.f32 %v1284_v9, 0.0 }
  0xee   : > { %v538_v12 = vpop.f32.mrf.mxu0  ;;  %v698_v13 = vpop.f32.mrf.mxu1 }
  0xef   : > { %922 = vst [vmem:[%s1818_s25 + $0x8] sm:$0xff] %v858_v10  ;;  %954 = vst [vmem:[%s1818_s25 + $0x108] sm:$0xff] %v890_v11  ;;  %v857_v14 = vmax.f32 %v538_v12, 0.0  ;;  %v889_v15 = vmax.f32 %v698_v13, 0.0 }
  0xf0   : > { %v1239_v16 = vpop.f32.mrf.mxu0  ;;  %v1287_v17 = vpop.f32.mrf.mxu1 }
  0xf1   : > { %921 = vst [vmem:[%s1818_s25] sm:$0xff] %v857_v14  ;;  %953 = vst [vmem:[%s1818_s25 + $0x100] sm:$0xff] %v889_v15  ;;  %v860_v18 = vmax.f32 %v1239_v16, 0.0  ;;  %v892_v19 = vmax.f32 %v1287_v17, 0.0 }
  0xf2   : > { %v548_v20 = vpop.f32.mrf.mxu0  ;;  %v708_v21 = vpop.f32.mrf.mxu1 }
  0xf3   : > { %924 = vst [vmem:[%s1818_s25 + $0x18] sm:$0xff] %v860_v18  ;;  %956 = vst [vmem:[%s1818_s25 + $0x118] sm:$0xff] %v892_v19  ;;  %v859_v22 = vmax.f32 %v548_v20, 0.0  ;;  %v891_v23 = vmax.f32 %v708_v21, 0.0 }
  0xf4   : > { %v1242_v24 = vpop.f32.mrf.mxu0  ;;  %v1290_v25 = vpop.f32.mrf.mxu1 }
  0xf5   : > { %923 = vst [vmem:[%s1818_s25 + $0x10] sm:$0xff] %v859_v22  ;;  %955 = vst [vmem:[%s1818_s25 + $0x110] sm:$0xff] %v891_v23  ;;  %v862_v26 = vmax.f32 %v1242_v24, 0.0  ;;  %v894_v27 = vmax.f32 %v1290_v25, 0.0 }
  0xf6   : > { %v558_v28 = vpop.f32.mrf.mxu0  ;;  %v718_v29 = vpop.f32.mrf.mxu1 }
  0xf7   : > { %926 = vst [vmem:[%s1818_s25 + $0x28] sm:$0xff] %v862_v26  ;;  %958 = vst [vmem:[%s1818_s25 + $0x128] sm:$0xff] %v894_v27  ;;  %v861_v30 = vmax.f32 %v558_v28, 0.0  ;;  %v893_v31 = vmax.f32 %v718_v29, 0.0 }
  0xf8   : > { %v1245_v32 = vpop.f32.mrf.mxu0  ;;  %v1293_v33 = vpop.f32.mrf.mxu1 }
  0xf9   : > { %925 = vst [vmem:[%s1818_s25 + $0x20] sm:$0xff] %v861_v30  ;;  %957 = vst [vmem:[%s1818_s25 + $0x120] sm:$0xff] %v893_v31  ;;  %v864_v34 = vmax.f32 %v1245_v32, 0.0  ;;  %v896_v35 = vmax.f32 %v1293_v33, 0.0 }
  0xfa   : > { %v568_v36 = vpop.f32.mrf.mxu0  ;;  %v728_v37 = vpop.f32.mrf.mxu1 }
  0xfb   : > { %928 = vst [vmem:[%s1818_s25 + $0x38] sm:$0xff] %v864_v34  ;;  %960 = vst [vmem:[%s1818_s25 + $0x138] sm:$0xff] %v896_v35  ;;  %v863_v38 = vmax.f32 %v568_v36, 0.0  ;;  %v895_v39 = vmax.f32 %v728_v37, 0.0 }
  0xfc   : > { %v1248_v40 = vpop.f32.mrf.mxu0  ;;  %v1296_v41 = vpop.f32.mrf.mxu1 }
  0xfd   : > { %927 = vst [vmem:[%s1818_s25 + $0x30] sm:$0xff] %v863_v38  ;;  %959 = vst [vmem:[%s1818_s25 + $0x130] sm:$0xff] %v895_v39  ;;  %v866_v42 = vmax.f32 %v1248_v40, 0.0  ;;  %v898_v43 = vmax.f32 %v1296_v41, 0.0 }
  0xfe   : > { %v578_v44 = vpop.f32.mrf.mxu0  ;;  %v738_v45 = vpop.f32.mrf.mxu1 }
  0xff   : > { %930 = vst [vmem:[%s1818_s25 + $0x48] sm:$0xff] %v866_v42  ;;  %962 = vst [vmem:[%s1818_s25 + $0x148] sm:$0xff] %v898_v43  ;;  %v865_v46 = vmax.f32 %v578_v44, 0.0  ;;  %v897_v47 = vmax.f32 %v738_v45, 0.0 }
 0x100   : > { %v1251_v48 = vpop.f32.mrf.mxu0  ;;  %v1299_v49 = vpop.f32.mrf.mxu1 }
 0x101   : > { %929 = vst [vmem:[%s1818_s25 + $0x40] sm:$0xff] %v865_v46  ;;  %961 = vst [vmem:[%s1818_s25 + $0x140] sm:$0xff] %v897_v47  ;;  %v868_v50 = vmax.f32 %v1251_v48, 0.0  ;;  %v900_v51 = vmax.f32 %v1299_v49, 0.0 }
 0x102   : > { %v588_v52 = vpop.f32.mrf.mxu0  ;;  %v748_v53 = vpop.f32.mrf.mxu1 }
 0x103   : > { %932 = vst [vmem:[%s1818_s25 + $0x58] sm:$0xff] %v868_v50  ;;  %964 = vst [vmem:[%s1818_s25 + $0x158] sm:$0xff] %v900_v51  ;;  %v867_v54 = vmax.f32 %v588_v52, 0.0  ;;  %v899_v55 = vmax.f32 %v748_v53, 0.0 }
 0x104   : > { %v1254_v56 = vpop.f32.mrf.mxu0  ;;  %v1302_v57 = vpop.f32.mrf.mxu1 }
 0x105   : > { %931 = vst [vmem:[%s1818_s25 + $0x50] sm:$0xff] %v867_v54  ;;  %963 = vst [vmem:[%s1818_s25 + $0x150] sm:$0xff] %v899_v55  ;;  %v870_v58 = vmax.f32 %v1254_v56, 0.0  ;;  %v902_v59 = vmax.f32 %v1302_v57, 0.0 }
 0x106   : > { %v598_v60 = vpop.f32.mrf.mxu0  ;;  %v758_v61 = vpop.f32.mrf.mxu1 }
 0x107   : > { %934 = vst [vmem:[%s1818_s25 + $0x68] sm:$0xff] %v870_v58  ;;  %966 = vst [vmem:[%s1818_s25 + $0x168] sm:$0xff] %v902_v59  ;;  %v869_v62 = vmax.f32 %v598_v60, 0.0  ;;  %v901_v63 = vmax.f32 %v758_v61, 0.0 }
 0x108   : > { %v1257_v0 = vpop.f32.mrf.mxu0  ;;  %v1305_v1 = vpop.f32.mrf.mxu1 }
 0x109   : > { %933 = vst [vmem:[%s1818_s25 + $0x60] sm:$0xff] %v869_v62  ;;  %965 = vst [vmem:[%s1818_s25 + $0x160] sm:$0xff] %v901_v63  ;;  %v872_v2 = vmax.f32 %v1257_v0, 0.0  ;;  %v904_v3 = vmax.f32 %v1305_v1, 0.0 }
 0x10a   : > { %v608_v4 = vpop.f32.mrf.mxu0  ;;  %v768_v5 = vpop.f32.mrf.mxu1 }
 0x10b   : > { %936 = vst [vmem:[%s1818_s25 + $0x78] sm:$0xff] %v872_v2  ;;  %968 = vst [vmem:[%s1818_s25 + $0x178] sm:$0xff] %v904_v3  ;;  %v871_v6 = vmax.f32 %v608_v4, 0.0  ;;  %v903_v7 = vmax.f32 %v768_v5, 0.0 }
 0x10c   : > { %v1260_v8 = vpop.f32.mrf.mxu0  ;;  %v1308_v9 = vpop.f32.mrf.mxu1 }
 0x10d   : > { %935 = vst [vmem:[%s1818_s25 + $0x70] sm:$0xff] %v871_v6  ;;  %967 = vst [vmem:[%s1818_s25 + $0x170] sm:$0xff] %v903_v7  ;;  %v874_v10 = vmax.f32 %v1260_v8, 0.0  ;;  %v906_v11 = vmax.f32 %v1308_v9, 0.0 }
 0x10e   : > { %v618_v12 = vpop.f32.mrf.mxu0  ;;  %v778_v13 = vpop.f32.mrf.mxu1 }
 0x10f   : > { %938 = vst [vmem:[%s1818_s25 + $0x88] sm:$0xff] %v874_v10  ;;  %970 = vst [vmem:[%s1818_s25 + $0x188] sm:$0xff] %v906_v11  ;;  %v873_v14 = vmax.f32 %v618_v12, 0.0  ;;  %v905_v15 = vmax.f32 %v778_v13, 0.0 }
 0x110   : > { %v1263_v16 = vpop.f32.mrf.mxu0  ;;  %v1311_v17 = vpop.f32.mrf.mxu1 }
 0x111   : > { %937 = vst [vmem:[%s1818_s25 + $0x80] sm:$0xff] %v873_v14  ;;  %969 = vst [vmem:[%s1818_s25 + $0x180] sm:$0xff] %v905_v15  ;;  %v876_v18 = vmax.f32 %v1263_v16, 0.0  ;;  %v908_v19 = vmax.f32 %v1311_v17, 0.0 }
 0x112   : > { %v628_v20 = vpop.f32.mrf.mxu0  ;;  %v788_v21 = vpop.f32.mrf.mxu1 }
 0x113   : > { %940 = vst [vmem:[%s1818_s25 + $0x98] sm:$0xff] %v876_v18  ;;  %972 = vst [vmem:[%s1818_s25 + $0x198] sm:$0xff] %v908_v19  ;;  %v875_v22 = vmax.f32 %v628_v20, 0.0  ;;  %v907_v23 = vmax.f32 %v788_v21, 0.0 }
 0x114   : > { %v1266_v24 = vpop.f32.mrf.mxu0  ;;  %v1314_v25 = vpop.f32.mrf.mxu1 }
 0x115   : > { %939 = vst [vmem:[%s1818_s25 + $0x90] sm:$0xff] %v875_v22  ;;  %971 = vst [vmem:[%s1818_s25 + $0x190] sm:$0xff] %v907_v23  ;;  %v878_v26 = vmax.f32 %v1266_v24, 0.0  ;;  %v910_v27 = vmax.f32 %v1314_v25, 0.0 }
 0x116   : > { %v638_v28 = vpop.f32.mrf.mxu0  ;;  %v798_v29 = vpop.f32.mrf.mxu1 }
 0x117   : > { %942 = vst [vmem:[%s1818_s25 + $0xa8] sm:$0xff] %v878_v26  ;;  %974 = vst [vmem:[%s1818_s25 + $0x1a8] sm:$0xff] %v910_v27  ;;  %v877_v30 = vmax.f32 %v638_v28, 0.0  ;;  %v909_v31 = vmax.f32 %v798_v29, 0.0 }
 0x118   : > { %v1269_v32 = vpop.f32.mrf.mxu0  ;;  %v1317_v33 = vpop.f32.mrf.mxu1 }
 0x119   : > { %941 = vst [vmem:[%s1818_s25 + $0xa0] sm:$0xff] %v877_v30  ;;  %973 = vst [vmem:[%s1818_s25 + $0x1a0] sm:$0xff] %v909_v31  ;;  %v880_v34 = vmax.f32 %v1269_v32, 0.0  ;;  %v912_v35 = vmax.f32 %v1317_v33, 0.0 }
 0x11a   : > { %v648_v36 = vpop.f32.mrf.mxu0  ;;  %v808_v37 = vpop.f32.mrf.mxu1 }
 0x11b   : > { %944 = vst [vmem:[%s1818_s25 + $0xb8] sm:$0xff] %v880_v34  ;;  %976 = vst [vmem:[%s1818_s25 + $0x1b8] sm:$0xff] %v912_v35  ;;  %v879_v38 = vmax.f32 %v648_v36, 0.0  ;;  %v911_v39 = vmax.f32 %v808_v37, 0.0 }
 0x11c   : > { %v1272_v40 = vpop.f32.mrf.mxu0  ;;  %v1320_v41 = vpop.f32.mrf.mxu1 }
 0x11d   : > { %943 = vst [vmem:[%s1818_s25 + $0xb0] sm:$0xff] %v879_v38  ;;  %975 = vst [vmem:[%s1818_s25 + $0x1b0] sm:$0xff] %v911_v39  ;;  %v882_v42 = vmax.f32 %v1272_v40, 0.0  ;;  %v914_v43 = vmax.f32 %v1320_v41, 0.0 }
 0x11e   : > { %v658_v44 = vpop.f32.mrf.mxu0  ;;  %v818_v45 = vpop.f32.mrf.mxu1 }
 0x11f   : > { %946 = vst [vmem:[%s1818_s25 + $0xc8] sm:$0xff] %v882_v42  ;;  %978 = vst [vmem:[%s1818_s25 + $0x1c8] sm:$0xff] %v914_v43  ;;  %v881_v46 = vmax.f32 %v658_v44, 0.0  ;;  %v913_v47 = vmax.f32 %v818_v45, 0.0 }
 0x120   : > { %v1275_v48 = vpop.f32.mrf.mxu0  ;;  %v1323_v49 = vpop.f32.mrf.mxu1 }
 0x121   : > { %945 = vst [vmem:[%s1818_s25 + $0xc0] sm:$0xff] %v881_v46  ;;  %977 = vst [vmem:[%s1818_s25 + $0x1c0] sm:$0xff] %v913_v47  ;;  %v884_v50 = vmax.f32 %v1275_v48, 0.0  ;;  %v916_v51 = vmax.f32 %v1323_v49, 0.0 }
 0x122   : > { %v668_v52 = vpop.f32.mrf.mxu0  ;;  %v828_v53 = vpop.f32.mrf.mxu1 }
 0x123   : > { %948 = vst [vmem:[%s1818_s25 + $0xd8] sm:$0xff] %v884_v50  ;;  %980 = vst [vmem:[%s1818_s25 + $0x1d8] sm:$0xff] %v916_v51  ;;  %v883_v54 = vmax.f32 %v668_v52, 0.0  ;;  %v915_v55 = vmax.f32 %v828_v53, 0.0 }
 0x124   : > { %v1278_v56 = vpop.f32.mrf.mxu0  ;;  %v1326_v57 = vpop.f32.mrf.mxu1 }
 0x125   : > { %947 = vst [vmem:[%s1818_s25 + $0xd0] sm:$0xff] %v883_v54  ;;  %979 = vst [vmem:[%s1818_s25 + $0x1d0] sm:$0xff] %v915_v55  ;;  %v886_v58 = vmax.f32 %v1278_v56, 0.0  ;;  %v918_v59 = vmax.f32 %v1326_v57, 0.0 }
 0x126   : > { %v678_v60 = vpop.f32.mrf.mxu0  ;;  %v838_v61 = vpop.f32.mrf.mxu1 }
 0x127   : > { %950 = vst [vmem:[%s1818_s25 + $0xe8] sm:$0xff] %v886_v58  ;;  %982 = vst [vmem:[%s1818_s25 + $0x1e8] sm:$0xff] %v918_v59  ;;  %v885_v62 = vmax.f32 %v678_v60, 0.0  ;;  %v917_v63 = vmax.f32 %v838_v61, 0.0 }
 0x128   : > { %v1281_v0 = vpop.f32.mrf.mxu0  ;;  %v1329_v1 = vpop.f32.mrf.mxu1 }
 0x129   : > { %949 = vst [vmem:[%s1818_s25 + $0xe0] sm:$0xff] %v885_v62  ;;  %981 = vst [vmem:[%s1818_s25 + $0x1e0] sm:$0xff] %v917_v63  ;;  %v888_v2 = vmax.f32 %v1281_v0, 0.0  ;;  %v920_v3 = vmax.f32 %v1329_v1, 0.0 }
 0x12a   : > { %v688_v4 = vpop.f32.mrf.mxu0  ;;  %v848_v5 = vpop.f32.mrf.mxu1 }
 0x12b   : > { %952 = vst [vmem:[%s1818_s25 + $0xf8] sm:$0xff] %v888_v2  ;;  %984 = vst [vmem:[%s1818_s25 + $0x1f8] sm:$0xff] %v920_v3  ;;  %v887_v6 = vmax.f32 %v688_v4, 0.0  ;;  %v919_v7 = vmax.f32 %v848_v5, 0.0 }
 0x12d   : > { %951 = vst [vmem:[%s1818_s25 + $0xf0] sm:$0xff] %v887_v6  ;;  %983 = vst [vmem:[%s1818_s25 + $0x1f0] sm:$0xff] %v919_v7 }
 0x12e   : > { %1409 = shalt.err (!%p1406_p7)
}
 0x12f   : > { %s1410_s8 = scalar_lea.hbm %s1885_s12, 8192  ;;  %s1414_s18 = scalar_lea.hbm %s1941_s2, 16384 }
 0x130   : > { %p1411_p8 = scmp.ne.s32.totalorder %s1885_s12, %s1410_s8  ;;  %p1415_p13 = scmp.lt.s32.totalorder %s1885_s12, %s1941_s2 }
 0x131   : > { %p1416_p0 = scmp.lt.s32.totalorder %s1414_s18, %s1410_s8 }
 0x132   : > { %p1412_p11 = pnand %p1411_p8, %p1532_p5 }
 0x133   : > { %p1417_p1 = por %p1416_p0, %p1415_p13 }
 0x134   : > { %p1413_p12 = pneg %p1412_p11 }
 0x136   : > { %p1418_p2 = pnand %p1417_p1, %p1413_p12 }
 0x138   : > { %1421 = shalt.err (!%p1418_p2)
}
 0x139   : > { %s1475_s24 = smov 128   ;;  %s1476_s25 = smov 256  }
 0x13a   : > { %s1477_s26 = smov 8  }
 0x13b   : > { %1338 = dma.vmem_to_hbm [thread:$0]  (%p1532_p5), %s1887_s27, 8192, %s1885_s12, %s986_s3, %s1475_s24, %s1476_s25, %s1477_s26  }
 0x13c PF: > { %s1015_s28 = sand.u32 1, %s1452_s9   ;;  %p1341_p3 = pnand %p1083_p10, %p1543_p9 }
 0x13d   : > { %s1016_s29 = scalar_lea.sflag [#allocation4], %s1015_s28 }
 0x13e   : > { %p1342_p4 = pneg %p1341_p3 }
 0x140   : > { %1447 = dma.done.wait (%p1342_p4), %s1016_s29, 8192  }
 0x141   : > { %1449 = vsyncadd (%p1342_p4), %s1016_s29, 4294959104  ;;  %s15_s14 = sadd.s32 1, %s1472_s14   ;;  %s1944_s9 = smov %s1456_s10 }
 0x142   : > { %p12_p6 = scmp.ge.s32.totalorder %s15_s14, 4   ;;  %s1945_s10 = smov %s1460_s11 }
 0x143   : > { %s1946_s11 = smov %s1541_s21  ;;  %s1947_s12 = smov %s1468_s13 }
 0x144   : > { %s1948_s13 = smov %s1950_s17  ;;  %14 = sbr.rel (!%p12_p6) target bundleno = 4 (0x4), region = 106 }
 0x149   :  { %1021 = vsyncpa [#allocation4], 1 }
 0x14a   :  { %1023 = vsyncpa [#allocation4 + $0x1], 1 }

</bundles_post_ra>
